<compile_context>
chip_gen: v7x
topology: tpu7x:2x2x1
jax: 0.10.0
libtpu: 0.0.40
codegen_flags: <defaults>
</compile_context>

<pallas_src>
import jax
import jax.numpy as jnp
from jax.experimental import pallas as pl
from jax.experimental.pallas import tpu as pltpu


LANES = 128
# Below this many elements (256 KiB of f32) the op is launch-overhead bound:
# don't launch a Pallas kernel, let XLA fuse the scale+shift.
_SMALL_N_ELEMS = 64 * 1024


def _scale_shift_kernel(w_ref, b_ref, x_ref, o_ref):
    # w_ref / b_ref: SMEM (1,) scalars (the Linear(1,1) weight and bias).
    # x_ref / o_ref: VMEM (tile_rows, 128) lane-dense slabs.
    o_ref[...] = (x_ref[...] * w_ref[0] + b_ref[0]).astype(o_ref.dtype)


def linear_forward_pallas(x, weight, bias, *, max_tile_rows=4096):
    """nn.Linear(1, 1) forward: y = x @ W^T + b for x of shape (N, 1)."""
    n, in_f = x.shape
    out_f = weight.shape[0]
    assert in_f == 1 and out_f == 1, "kernel is specialized to Linear(1, 1)"

    # Enforce the (8, 128) sublane constraint even for caller-supplied bounds.
    max_tile_rows = max(8, (max_tile_rows // 8) * 8)

    rows = -(-n // LANES)                       # ceil(N / 128)
    rows8 = ((rows + 7) // 8) * 8               # sublane-aligned row count
    tile_rows = min(max_tile_rows, rows8)

    # v7x megacore: if everything fits in one tile but there's >=2 MiB of
    # data, split into two grid steps so both TensorCores get work.
    if rows8 <= tile_rows and rows8 >= 4096:
        tile_rows = ((rows8 // 2 + 7) // 8) * 8

    num_tiles = -(-rows8 // tile_rows)
    rows_padded = num_tiles * tile_rows
    n_padded = rows_padded * LANES

    # Lane-dense slab: (N, 1) -> (rows_padded, 128). Skip the pad (an extra
    # full HBM read+write) when the shape already lines up.
    if n_padded == n:
        x_slab = x.reshape(rows_padded, LANES)
    else:
        x_slab = jnp.pad(x.reshape(-1), (0, n_padded - n)).reshape(rows_padded, LANES)

    # Scalar parameters go straight to SMEM; no concat on the critical path.
    w_s = weight.reshape(-1).astype(x.dtype)
    b_s = bias.reshape(-1).astype(x.dtype)

    out_slab = pl.pallas_call(
        _scale_shift_kernel,
        out_shape=jax.ShapeDtypeStruct((rows_padded, LANES), x.dtype),
        grid_spec=pltpu.PrefetchScalarGridSpec(
            num_scalar_prefetch=0,
            grid=(num_tiles,),
            in_specs=[
                pl.BlockSpec(memory_space=pltpu.MemorySpace.SMEM),    # w
                pl.BlockSpec(memory_space=pltpu.MemorySpace.SMEM),    # b
                pl.BlockSpec((tile_rows, LANES), lambda i: (i, 0)),   # x slab
            ],
            out_specs=pl.BlockSpec((tile_rows, LANES), lambda i: (i, 0)),
        ),
        compiler_params=pltpu.CompilerParams(
            dimension_semantics=("parallel",),   # megacore-splittable on v7x
        ),
        # x_slab is a fresh temporary -> donate its HBM buffer to the output.
        input_output_aliases={2: 0},
    )(w_s, b_s, x_slab)

    # Back to the PyTorch layout (N, 1); drop the padded tail only if needed.
    if n_padded == n:
        return out_slab.reshape(n, out_f)
    return out_slab.reshape(-1)[:n].reshape(n, out_f)


def linear_forward(x, weight, bias):
    """Auto-dispatch: tiny inputs stay in plain JAX so XLA can fuse them."""
    if x.size < _SMALL_N_ELEMS:
        return x @ weight.T + bias
    return linear_forward_pallas(x, weight, bias)


if __name__ == "__main__":
    key = jax.random.PRNGKey(0)
    k_x, k_w, k_b = jax.random.split(key, 3)

    N, IN, OUT = 1000, 1, 1   # matches the reference script's n = 1000

    # Deterministic inputs (mirrors np.random uniform [0,1) data in the reference).
    x = jax.random.uniform(k_x, (N, IN), dtype=jnp.float32)

    # Deterministic parameter init, matching nn.Linear's U(-1/sqrt(IN), 1/sqrt(IN)).
    bound = 1.0 / (IN ** 0.5)
    weight = jax.random.uniform(k_w, (OUT, IN), minval=-bound, maxval=bound,
                                dtype=jnp.float32)
    bias = jax.random.uniform(k_b, (OUT,), minval=-bound, maxval=bound,
                              dtype=jnp.float32)

    # Force the Pallas path (auto-dispatch would route this toy size to the
    # fused plain-JAX path); jit so the wrapper pad/reshape fuse around it.
    fwd = jax.jit(linear_forward_pallas)
    y = jax.block_until_ready(fwd(x, weight, bias))

    # Sanity check against plain-JAX reference of the same forward pass.
    y_ref = x @ weight.T + bias
    assert y.shape == (N, OUT)
    assert jnp.allclose(y, y_ref, atol=1e-5, rtol=1e-5)

    # The auto-dispatch wrapper (small-N fused path) must agree too.
    y_auto = jax.block_until_ready(linear_forward(x, weight, bias))
    assert jnp.allclose(y_auto, y_ref, atol=1e-5, rtol=1e-5)

    print("KERNEL_OK")
</pallas_src>

<mosaic_0001>
module attributes {stable_mosaic.version = 11 : i64} {
  func.func @_scale_shift_kernel(%arg0: i32, %arg1: memref<1xf32, #tpu.memory_space<smem>>, %arg2: memref<1xf32, #tpu.memory_space<smem>>, %arg3: memref<8x128xf32, #tpu.memory_space<vmem>>, %arg4: memref<8x128xf32, #tpu.memory_space<vmem>>) attributes {dimension_semantics = [#tpu.dimension_semantics<parallel>], iteration_bounds = array<i64: 1>, scalar_prefetch = 0 : i64, scratch_operands = 0 : i64, tpu.core_type = #tpu.core_type<tc>, window_params = [{transform_indices = @transform_0, window_bounds = array<i64: 1>}, {transform_indices = @transform_1, window_bounds = array<i64: 1>}, {transform_indices = @transform_2, window_bounds = array<i64: 8, 128>}, {transform_indices = @transform_3, window_bounds = array<i64: 8, 128>}]} {
    %c0 = arith.constant 0 : index
    %c0_0 = arith.constant 0 : index
    %0 = vector.load %arg3[%c0, %c0_0] : memref<8x128xf32, #tpu.memory_space<vmem>>, vector<8x128xf32>
    %c0_1 = arith.constant 0 : index
    %1 = memref.load %arg1[%c0_1] : memref<1xf32, #tpu.memory_space<smem>>
    %2 = vector.broadcast %1 : f32 to vector<8x128xf32>
    %3 = arith.mulf %0, %2 : vector<8x128xf32>
    %c0_2 = arith.constant 0 : index
    %4 = memref.load %arg2[%c0_2] : memref<1xf32, #tpu.memory_space<smem>>
    %5 = vector.broadcast %4 : f32 to vector<8x128xf32>
    %6 = arith.addf %3, %5 : vector<8x128xf32>
    %c0_3 = arith.constant 0 : index
    %c0_4 = arith.constant 0 : index
    %7 = vector.load %arg4[%c0_3, %c0_4] : memref<8x128xf32, #tpu.memory_space<vmem>>, vector<8x128xf32>
    tpu.vector_store %arg4[%c0_3, %c0_4], %6 {strides = array<i32>} : memref<8x128xf32, #tpu.memory_space<vmem>>, vector<8x128xf32>,
    return
  }
  func.func @transform_0(%arg0: i32) -> i32 {
    %c0_i32 = arith.constant 0 : i32
    %c0_i32_0 = arith.constant 0 : i32
    return %c0_i32 : i32
  }
  func.func @transform_1(%arg0: i32) -> i32 {
    %c0_i32 = arith.constant 0 : i32
    %c0_i32_0 = arith.constant 0 : i32
    return %c0_i32 : i32
  }
  func.func @transform_2(%arg0: i32) -> (i32, i32) {
    %c0_i32 = arith.constant 0 : i32
    %c0_i32_0 = arith.constant 0 : i32
    return %arg0, %c0_i32 : i32, i32
  }
  func.func @transform_3(%arg0: i32) -> (i32, i32) {
    %c0_i32 = arith.constant 0 : i32
    %c0_i32_0 = arith.constant 0 : i32
    return %arg0, %c0_i32 : i32, i32
  }
}

</mosaic_0001>

<bundles_post_ra>
// kernel: linear_forward_pallas.1
= control target key start
LH: loop header
LB: loop body
LE: loop exit
PB: predicated region body
PF: predicated region fallthrough
CT: control target
= control target key end

     0   :  { %s60_s0 = inlined_call_operand.<no memory space> [shape: f32[1], index: 0, kind: input, shape index: {}]   ;;  %s61_s1 = inlined_call_operand.<no memory space> [shape: f32[1], index: 1, kind: input, shape index: {}]   ;;  %s62_s2 = inlined_call_operand.vmem [shape: f32[8,128], index: 2, kind: input, shape index: {}, may-alias: {2,3}]   ;;  %s63_s3 = inlined_call_operand.vmem [shape: f32[8,128], index: 3, kind: output, shape index: {}, may-alias: {2,3}]  }
   0x1   :  { %v16_v0 = vld [vmem:[%s62_s2] sm:$0xff]  ;;  %v18_v1 = vstv %s60_s0  ;;  %v21_v2 = vstv %s61_s1 }
   0x2   :  { %v19_v3 = vmul.f32 %v18_v1, %v16_v0 }
   0x4   :  { %v22_v4 = vadd.f32 %v21_v2, %v19_v3 }
   0x6   :  { %23 = vst [vmem:[%s63_s3] sm:$0xff] %v22_v4 }

</bundles_post_ra>
